<compile_context>
chip_gen: v5e
topology: v5e:2x2
jax: 0.10.0
libtpu: 0.0.40
codegen_flags: <defaults>
</compile_context>

<pallas_src>
import functools

import jax
import jax.numpy as jnp
from jax.experimental import pallas as pl
from jax.experimental.pallas import tpu as pltpu

BN_EPS = 1e-5
LANE = 128
SUBLANE = 8
VMEM_LIMIT = 48 * 1024 * 1024   # > 16/32 MiB scoped defaults, < v7x 64 MiB physical


def _round_up(x, m):
    return (x + m - 1) // m * m


# ---------------------- backbone tail: global pool + project ----------------------- #

def _tail_kernel(x_ref, wp_ref, bp_ref, feat_ref):
    # Global average pool over the spatial axis (XLU reduce; cheap relative to
    # the weight-streaming-bound matmul stages), then one MXU projection with
    # the un-repeated [C, F] weight.
    pooled = jnp.mean(x_ref[...], axis=-1)                              # [Bp, C]  f32
    feat_ref[...] = (jnp.dot(pooled.astype(jnp.bfloat16), wp_ref[...],
                             preferred_element_type=jnp.float32)
                     + bp_ref[...])                                     # [Bp, F]  f32


def _backbone_tail(x3, wp, bp):
    Bp = x3.shape[0]
    F = wp.shape[1]
    return pl.pallas_call(
        _tail_kernel,
        out_shape=jax.ShapeDtypeStruct((Bp, F), jnp.float32),
        compiler_params=pltpu.CompilerParams(vmem_limit_bytes=VMEM_LIMIT),
    )(x3, wp, bp)


# ------------------------------- classifier heads ---------------------------------- #

def _head_kernel(feat_ref, w1_ref, b1_ref, w2_ref, b2_ref, out_ref):
    # First Linear (BatchNorm folded in) + ReLU (Dropout = identity at eval).
    h = (jnp.dot(feat_ref[...].astype(jnp.bfloat16), w1_ref[...],
                 preferred_element_type=jnp.float32)
         + b1_ref[...])                                                 # [Bp, hid] f32
    h = jnp.maximum(h, 0.0)
    # Second Linear for this head only; lane-dense padded [Bp, NCp] store.
    out_ref[...] = (jnp.dot(h.astype(jnp.bfloat16), w2_ref[...],
                            preferred_element_type=jnp.float32)
                    + b2_ref[...])


def _heads(feat, w1f, b1f, w2p, b2p):
    Bp, F = feat.shape
    Hd, _, hid = w1f.shape
    NCp = w2p.shape[2]
    grid_spec = pltpu.PrefetchScalarGridSpec(
        num_scalar_prefetch=0,
        grid=(Hd,),
        in_specs=[
            # feat is the same block every head -> DMA'd once, resident in VMEM.
            pl.BlockSpec((Bp, F), lambda h: (0, 0)),
            # Per-head weight/bias blocks: BlockSpec auto double-buffers, so
            # head h+1's weight DMA overlaps head h's matmuls.
            # (pipeline_mode=pl.Buffered(3) is a further knob to sweep.)
            pl.BlockSpec((None, F, hid), lambda h: (h, 0, 0)),
            pl.BlockSpec((None, 1, hid), lambda h: (h, 0, 0)),
            pl.BlockSpec((None, hid, NCp), lambda h: (h, 0, 0)),
            pl.BlockSpec((None, 1, NCp), lambda h: (h, 0, 0)),
        ],
        out_specs=pl.BlockSpec((Bp, NCp), lambda h: (0, h)),
    )
    return pl.pallas_call(
        _head_kernel,
        out_shape=jax.ShapeDtypeStruct((Bp, Hd * NCp), jnp.float32),
        grid_spec=grid_spec,
        compiler_params=pltpu.CompilerParams(
            # Heads are independent -> shard across v7x's two TensorCores.
            dimension_semantics=("parallel",),
            vmem_limit_bytes=VMEM_LIMIT),
    )(feat, w1f, b1f, w2p, b2p)


@functools.partial(jax.jit, static_argnames=("parts", "num_classes"))
def ft_net_lpn_forward(x_nchw, prepped, *, parts, num_classes):
    B, C, H, W = x_nchw.shape
    Hd = parts + 1
    NCp = prepped["w2p"].shape[2]
    # Pad batch to a sublane multiple so loads/stores are sublane-full.
    Bp = max(SUBLANE, _round_up(B, SUBLANE))
    x3 = x_nchw.reshape(B, C, H * W)                          # contiguous NCHW
    x3 = jnp.pad(x3, ((0, Bp - B), (0, 0), (0, 0)))
    feat = _backbone_tail(x3, prepped["wp"], prepped["bp"])   # [Bp, F]
    out = _heads(feat, prepped["w1f"], prepped["b1f"],
                 prepped["w2p"], prepped["b2p"])              # [Bp, Hd*NCp]
    out = out.reshape(Bp, Hd, NCp)[:B, :, :num_classes]
    global_out = out[:, 0, :]
    local_outs = tuple(out[:, 1 + i, :] for i in range(parts))
    return global_out, local_outs, feat[:B]


# ---------------------------- parameter preparation --------------------------------- #

def init_params(key, C, in_features, hidden, num_classes, parts):
    Hd = parts + 1  # head 0 = global classifier, heads 1..parts = local heads
    ks = jax.random.split(key, 9)
    wp = jax.random.normal(ks[0], (C, in_features), jnp.float32) / jnp.sqrt(C)
    bp = jax.random.normal(ks[1], (1, in_features), jnp.float32) * 0.01
    w1 = (jax.random.normal(ks[2], (Hd, in_features, hidden), jnp.float32)
          / jnp.sqrt(in_features))
    b1 = jax.random.normal(ks[3], (Hd, 1, hidden), jnp.float32) * 0.01
    gamma = 1.0 + 0.1 * jax.random.normal(ks[4], (Hd, 1, hidden), jnp.float32)
    beta = 0.05 * jax.random.normal(ks[5], (Hd, 1, hidden), jnp.float32)
    mean = 0.1 * jax.random.normal(ks[6], (Hd, 1, hidden), jnp.float32)
    var = 0.5 + jax.random.uniform(ks[7], (Hd, 1, hidden), jnp.float32)
    w2 = (jax.random.normal(ks[8], (Hd, hidden, num_classes), jnp.float32)
          / jnp.sqrt(hidden))
    b2 = jnp.zeros((Hd, 1, num_classes), jnp.float32)
    return dict(wp=wp, bp=bp, w1=w1, b1=b1, gamma=gamma, beta=beta,
                mean=mean, var=var, w2=w2, b2=b2)


def prepare_params(p, num_classes):
    """One-time constant folding of the inference parameters."""
    Hd, F, hid = p["w1"].shape
    NC = p["w2"].shape[2]
    NCp = _round_up(NC, LANE)   # lane-dense padded class dim

    # Fold BatchNorm1d (eval mode, running stats) into the first Linear.
    scale = p["gamma"] * jax.lax.rsqrt(p["var"] + BN_EPS)               # [Hd,1,hid]
    w1f = (p["w1"] * scale).astype(jnp.bfloat16)                        # [Hd,F,hid]
    b1f = (p["b1"] - p["mean"]) * scale + p["beta"]                     # [Hd,1,hid]

    # Per-head second Linear, padded to a lane multiple (padding sliced off
    # in the wrapper).  NO block-diagonal zeros, NO pool-repeated weights.
    w2p = jnp.pad(p["w2"], ((0, 0), (0, 0), (0, NCp - NC))).astype(jnp.bfloat16)
    b2p = jnp.pad(p["b2"], ((0, 0), (0, 0), (0, NCp - NC)))

    return dict(wp=p["wp"].astype(jnp.bfloat16),   # bf16 MXU operands, f32 accum
                bp=p["bp"], w1f=w1f, b1f=b1f, w2p=w2p, b2p=b2p)


# ------------------------------- pure-JAX reference --------------------------------- #

def _reference(x_nchw, p):
    B = x_nchw.shape[0]
    pooled = jnp.mean(x_nchw.reshape(B, x_nchw.shape[1], -1), axis=-1)
    feat = pooled @ p["wp"] + p["bp"]
    outs = []
    for i in range(p["w1"].shape[0]):
        h = feat @ p["w1"][i] + p["b1"][i]
        h = ((h - p["mean"][i]) * jax.lax.rsqrt(p["var"][i] + BN_EPS)
             * p["gamma"][i] + p["beta"][i])
        h = jnp.maximum(h, 0.0)
        outs.append(h @ p["w2"][i] + p["b2"][i])
    return feat, jnp.stack(outs, axis=0)


# --------------------------------------- main --------------------------------------- #

if __name__ == "__main__":
    # Small stand-in shapes (real ResNet50 would be C=2048 features, hidden 512).
    B, C, H, W = 2, 4, 16, 16
    in_features, hidden, num_classes, parts = 256, 128, 16, 4

    key = jax.random.PRNGKey(0)
    kx, kp = jax.random.split(key)
    x = jax.random.normal(kx, (B, C, H, W), jnp.float32)
    params = init_params(kp, C, in_features, hidden, num_classes, parts)
    prepped = prepare_params(params, num_classes)

    global_out, local_outs, feat = ft_net_lpn_forward(
        x, prepped, parts=parts, num_classes=num_classes)
    jax.block_until_ready(global_out)
    for lo in local_outs:
        jax.block_until_ready(lo)
    jax.block_until_ready(feat)

    # Correctness check against the f32 pure-JAX reference (bf16 MXU operands
    # introduce ~1e-3 drift; tolerance relaxed accordingly).
    ref_feat, ref_outs = _reference(x, params)
    assert global_out.shape == (B, num_classes)
    assert len(local_outs) == parts
    assert jnp.allclose(feat, ref_feat, atol=1e-2, rtol=1e-2)
    assert jnp.allclose(global_out, ref_outs[0], atol=1e-2, rtol=1e-2)
    for i, lo in enumerate(local_outs):
        assert jnp.allclose(lo, ref_outs[1 + i], atol=1e-2, rtol=1e-2)

    print("KERNEL_OK")
</pallas_src>

<mosaic_0001>
module attributes {stable_mosaic.version = 11 : i64} {
  func.func @_tail_kernel(%arg0: memref<8x4x256xf32, #tpu.memory_space<vmem>>, %arg1: memref<4x256xbf16, #tpu.memory_space<vmem>>, %arg2: memref<1x256xf32, #tpu.memory_space<vmem>>, %arg3: memref<8x256xf32, #tpu.memory_space<vmem>>) attributes {dimension_semantics = [], scalar_prefetch = 0 : i64, scratch_operands = 0 : i64, tpu.core_type = #tpu.core_type<tc>} {
    %c0 = arith.constant 0 : index
    %c0_0 = arith.constant 0 : index
    %c0_1 = arith.constant 0 : index
    %0 = vector.load %arg0[%c0, %c0_0, %c0_1] : memref<8x4x256xf32, #tpu.memory_space<vmem>>, vector<8x4x256xf32>
    %cst = arith.constant dense<0.000000e+00> : vector<8x4xf32>
    %1 = vector.multi_reduction <add>, %0, %cst [2] : vector<8x4x256xf32> to vector<8x4xf32>
    %cst_2 = arith.constant 2.560000e+02 : f32
    %2 = vector.broadcast %cst_2 : f32 to vector<8x4xf32>
    %3 = arith.divf %1, %2 : vector<8x4xf32>
    %4 = arith.truncf %3 : vector<8x4xf32> to vector<8x4xbf16>
    %c0_3 = arith.constant 0 : index
    %c0_4 = arith.constant 0 : index
    %5 = vector.load %arg1[%c0_3, %c0_4] : memref<4x256xbf16, #tpu.memory_space<vmem>>, vector<4x256xbf16>
    %cst_5 = arith.constant dense<0.000000e+00> : vector<8x256xf32>
    %6 = tpu.matmul %4, %5, %cst_5 {dimension_numbers = #tpu.dot_dimension_numbers<[1], [0], [0], [1], [0, 0, 1, 1], [], []>} : vector<8x4xbf16>, vector<4x256xbf16>, vector<8x256xf32> -> vector<8x256xf32>
    %c0_6 = arith.constant 0 : index
    %c0_7 = arith.constant 0 : index
    %7 = vector.load %arg2[%c0_6, %c0_7] : memref<1x256xf32, #tpu.memory_space<vmem>>, vector<1x256xf32>
    %8 = vector.broadcast %7 : vector<1x256xf32> to vector<8x256xf32>
    %9 = arith.addf %6, %8 : vector<8x256xf32>
    %c0_8 = arith.constant 0 : index
    %c0_9 = arith.constant 0 : index
    %10 = vector.load %arg3[%c0_8, %c0_9] : memref<8x256xf32, #tpu.memory_space<vmem>>, vector<8x256xf32>
    tpu.vector_store %arg3[%c0_8, %c0_9], %9 {strides = array<i32>} : memref<8x256xf32, #tpu.memory_space<vmem>>, vector<8x256xf32>,
    return
  }
}

module attributes {stable_mosaic.version = 11 : i64} {
  func.func @_head_kernel(%arg0: i32, %arg1: memref<8x256xf32, #tpu.memory_space<vmem>>, %arg2: memref<1x256x128xbf16, #tpu.memory_space<vmem>>, %arg3: memref<1x1x128xf32, #tpu.memory_space<vmem>>, %arg4: memref<1x128x128xbf16, #tpu.memory_space<vmem>>, %arg5: memref<1x1x128xf32, #tpu.memory_space<vmem>>, %arg6: memref<8x128xf32, #tpu.memory_space<vmem>>) attributes {dimension_semantics = [#tpu.dimension_semantics<parallel>], iteration_bounds = array<i64: 5>, scalar_prefetch = 0 : i64, scratch_operands = 0 : i64, tpu.core_type = #tpu.core_type<tc>, window_params = [{pipeline_mode = #tpu.pipeline_mode<synchronous>, transform_indices = @transform_0, window_bounds = array<i64: 8, 256>}, {transform_indices = @transform_1, window_bounds = array<i64: 1, 256, 128>}, {transform_indices = @transform_2, window_bounds = array<i64: 1, 1, 128>}, {transform_indices = @transform_3, window_bounds = array<i64: 1, 128, 128>}, {transform_indices = @transform_4, window_bounds = array<i64: 1, 1, 128>}, {transform_indices = @transform_5, window_bounds = array<i64: 8, 128>}]} {
    %c0 = arith.constant 0 : index
    %c0_0 = arith.constant 0 : index
    %0 = vector.load %arg1[%c0, %c0_0] : memref<8x256xf32, #tpu.memory_space<vmem>>, vector<8x256xf32>
    %1 = arith.truncf %0 : vector<8x256xf32> to vector<8x256xbf16>
    %c0_1 = arith.constant 0 : index
    %c0_2 = arith.constant 0 : index
    %c0_3 = arith.constant 0 : index
    %2 = vector.load %arg2[%c0_1, %c0_2, %c0_3] : memref<1x256x128xbf16, #tpu.memory_space<vmem>>, vector<1x256x128xbf16>
    %3 = vector.shape_cast %2 : vector<1x256x128xbf16> to vector<256x128xbf16>
    %cst = arith.constant dense<0.000000e+00> : vector<8x128xf32>
    %4 = tpu.matmul %1, %3, %cst {dimension_numbers = #tpu.dot_dimension_numbers<[1], [0], [0], [1], [0, 0, 1, 1], [], []>} : vector<8x256xbf16>, vector<256x128xbf16>, vector<8x128xf32> -> vector<8x128xf32>
    %c0_4 = arith.constant 0 : index
    %c0_5 = arith.constant 0 : index
    %c0_6 = arith.constant 0 : index
    %5 = vector.load %arg3[%c0_4, %c0_5, %c0_6] : memref<1x1x128xf32, #tpu.memory_space<vmem>>, vector<1x1x128xf32>
    %6 = vector.shape_cast %5 : vector<1x1x128xf32> to vector<1x128xf32>
    %7 = vector.broadcast %6 : vector<1x128xf32> to vector<8x128xf32>
    %8 = arith.addf %4, %7 : vector<8x128xf32>
    %cst_7 = arith.constant 0.000000e+00 : f32
    %9 = vector.broadcast %cst_7 : f32 to vector<8x128xf32>
    %10 = arith.maximumf %8, %9 : vector<8x128xf32>
    %11 = arith.truncf %10 : vector<8x128xf32> to vector<8x128xbf16>
    %c0_8 = arith.constant 0 : index
    %c0_9 = arith.constant 0 : index
    %c0_10 = arith.constant 0 : index
    %12 = vector.load %arg4[%c0_8, %c0_9, %c0_10] : memref<1x128x128xbf16, #tpu.memory_space<vmem>>, vector<1x128x128xbf16>
    %13 = vector.shape_cast %12 : vector<1x128x128xbf16> to vector<128x128xbf16>
    %cst_11 = arith.constant dense<0.000000e+00> : vector<8x128xf32>
    %14 = tpu.matmul %11, %13, %cst_11 {dimension_numbers = #tpu.dot_dimension_numbers<[1], [0], [0], [1], [0, 0, 1, 1], [], []>} : vector<8x128xbf16>, vector<128x128xbf16>, vector<8x128xf32> -> vector<8x128xf32>
    %c0_12 = arith.constant 0 : index
    %c0_13 = arith.constant 0 : index
    %c0_14 = arith.constant 0 : index
    %15 = vector.load %arg5[%c0_12, %c0_13, %c0_14] : memref<1x1x128xf32, #tpu.memory_space<vmem>>, vector<1x1x128xf32>
    %16 = vector.shape_cast %15 : vector<1x1x128xf32> to vector<1x128xf32>
    %17 = vector.broadcast %16 : vector<1x128xf32> to vector<8x128xf32>
    %18 = arith.addf %14, %17 : vector<8x128xf32>
    %c0_15 = arith.constant 0 : index
    %c0_16 = arith.constant 0 : index
    %19 = vector.load %arg6[%c0_15, %c0_16] : memref<8x128xf32, #tpu.memory_space<vmem>>, vector<8x128xf32>
    tpu.vector_store %arg6[%c0_15, %c0_16], %18 {strides = array<i32>} : memref<8x128xf32, #tpu.memory_space<vmem>>, vector<8x128xf32>,
    return
  }
  func.func @transform_0(%arg0: i32) -> (i32, i32) {
    %c0_i32 = arith.constant 0 : i32
    %c0_i32_0 = arith.constant 0 : i32
    %c0_i32_1 = arith.constant 0 : i32
    return %c0_i32, %c0_i32_0 : i32, i32
  }
  func.func @transform_1(%arg0: i32) -> (i32, i32, i32) {
    %c0_i32 = arith.constant 0 : i32
    %c0_i32_0 = arith.constant 0 : i32
    %c0_i32_1 = arith.constant 0 : i32
    return %arg0, %c0_i32, %c0_i32_0 : i32, i32, i32
  }
  func.func @transform_2(%arg0: i32) -> (i32, i32, i32) {
    %c0_i32 = arith.constant 0 : i32
    %c0_i32_0 = arith.constant 0 : i32
    %c0_i32_1 = arith.constant 0 : i32
    return %arg0, %c0_i32, %c0_i32_0 : i32, i32, i32
  }
  func.func @transform_3(%arg0: i32) -> (i32, i32, i32) {
    %c0_i32 = arith.constant 0 : i32
    %c0_i32_0 = arith.constant 0 : i32
    %c0_i32_1 = arith.constant 0 : i32
    return %arg0, %c0_i32, %c0_i32_0 : i32, i32, i32
  }
  func.func @transform_4(%arg0: i32) -> (i32, i32, i32) {
    %c0_i32 = arith.constant 0 : i32
    %c0_i32_0 = arith.constant 0 : i32
    %c0_i32_1 = arith.constant 0 : i32
    return %arg0, %c0_i32, %c0_i32_0 : i32, i32, i32
  }
  func.func @transform_5(%arg0: i32) -> (i32, i32) {
    %c0_i32 = arith.constant 0 : i32
    %c0_i32_0 = arith.constant 0 : i32
    return %c0_i32, %arg0 : i32, i32
  }
}

</mosaic_0001>

<bundles_post_ra>
// kernel: ft_net_lpn_forward.3
= control target key start
LH: loop header
LB: loop body
LE: loop exit
PB: predicated region body
PF: predicated region fallthrough
CT: control target
= control target key end

     0   :  { %10 = vsyncpa [#allocation3], 0  ;;  %s1166_s0 = inlined_call_operand.vmem [shape: f32[8,256], index: 0, kind: input, shape index: {}]   ;;  %s1167_s1 = inlined_call_operand.hbm [shape: bf16[5,256,128], index: 1, kind: input, shape index: {}]   ;;  %s1168_s2 = inlined_call_operand.vmem [shape: f32[5,1,128], index: 2, kind: input, shape index: {}]   ;;  %s1169_s3 = inlined_call_operand.hbm [shape: bf16[5,128,128], index: 3, kind: input, shape index: {}]   ;;  %s1170_s4 = inlined_call_operand.vmem [shape: f32[5,1,128], index: 4, kind: input, shape index: {}]   ;;  %s1171_s5 = inlined_call_operand.vmem [shape: f32[8,640], index: 5, kind: output, shape index: {}]  }
   0x1   :  { %12 = vsyncpa [#allocation3 + $0x1], 0 }
   0x2   :  { %13 = vsyncpa [#allocation5], 0 }
   0x3   :  { %15 = vsyncpa [#allocation5 + $0x1], 0  ;;  %s984_s18 = smov 0   ;;  %s986_s19 = smov 0  }
   0x4   :  { %s988_s20 = smov 0   ;;  %s990_s21 = smov 0  }
   0x5 LB: > { %s1003_s22 = sadd.s32 4294967295, %s950_s21   ;;  %s1006_s23 = sadd.s32 1, %s950_s21   ;;  %s950_s21 = sphi %s990_s21, %s1179_s21   ;;  %s946_s20 = sphi %s988_s20, %s1178_s20   ;;  %s942_s19 = sphi %s986_s19, %s1177_s19   ;;  %s938_s18 = sphi %s984_s18, %s1176_s18  }
   0x6   : > { %s46_s24 = ssub.s32 %s950_s21, %s1006_s23  ;;  %s49_s25 = sadd.s32 1, %s946_s20 }
   0x7   : > { %p47_p0 = scmp.eq.s32.totalorder %s46_s24, 0  ;;  %p56_p1 = scmp.ne.s32.totalorder %s946_s20, %s942_s19 }
   0x8   : > { %p57_p2 = scmp.eq.s32.totalorder %s950_s21, 0  ;;  %p62_p3 = scmp.ne.s32.totalorder %s942_s19, %s938_s18 }
   0x9   : > { %s1016_s26 = scalar_select %p47_p0, %s946_s20, %s49_s25  }
   0xa   : > { %p1018_p4 = por %p57_p2, %p56_p1  ;;  %p63_p5 = scmp.eq.s32.totalorder %s1003_s22, 0 }
   0xb   : > { %p815_p6 = scmp.lt.s32.totalorder %s950_s21, 5  ;;  %s1029_s29 = sand.u32 1, %s946_s20  }
   0xc   : > { %p1024_p7 = por %p63_p5, %p62_p3  ;;  %s670_s30 = sshll.u32 %s1029_s29, 7 }
   0xd   : > { %s778_s6 = sshll.u32 %s950_s21, 7  ;;  %s197_s10 = scalar_lea.vmem [#allocation2], %s670_s30 }
   0xe   : > { %s202_s9 = scalar_lea.hbm %s1167_s1, %s778_s6  ;;  %s205_s11 = sshll.u32 %s197_s10, 4  ;;  %s206_s11 = int_to_ptr.vmem [resolvable:$true] %s205_s11 }
   0xf   : > { %s203_s12 = sshll.u32 %s202_s9, 4  ;;  %p1038_p8 = pnand %p815_p6, %p1018_p4  ;;  %s204_s12 = int_to_ptr.hbm [resolvable:$true] %s203_s12 }
  0x10   : > { %p676_p9 = scmp.ge.s32.totalorder %s950_s21, 1  ;;  %s194_s14 = scalar_lea.sflag [#allocation3], %s1029_s29 }
  0x11   : > { %s852_s15 = sshra.s32 %s204_s12, 4  ;;  %p856_p11 = pneg %p1038_p8  ;;  %s853_s15 = int_to_ptr.hbm [resolvable:$true] %s852_s15 }
  0x12   : > { %s854_s16 = scalar_lea.hbm %s853_s15, 128  ;;  %s859_s24 = scalar_lea.hbm %s1167_s1, 640 }
  0x13   : > { %p855_p10 = scmp.ne.s32.totalorder %s853_s15, %s854_s16  ;;  %p860_p0 = scmp.lt.s32.totalorder %s853_s15, %s1167_s1 }
  0x14   : > { %p861_p1 = scmp.lt.s32.totalorder %s859_s24, %s854_s16 }
  0x15   : > { %p857_p12 = pnand %p856_p11, %p855_p10 }
  0x16   : > { %p862_p2 = por %p861_p1, %p860_p0 }
  0x17   : > { %p858_p13 = pneg %p857_p12 }
  0x19   : > { %p863_p3 = pnand %p862_p2, %p858_p13 }
  0x1b   : > { %866 = shalt.err (!%p863_p3)
}
  0x1c   : > { %s952_s30 = smov 64   ;;  %s953_s6 = smov 4  }
  0x1d   : > { %811 = dma.hbm_to_vmem [thread:$0]  (!%p1038_p8), %s204_s12, 2048, %s206_s11, %s194_s14, %s952_s30, %s952_s30, %s953_s6  }
  0x1e   : > { %p247_p4 = scmp.lt.s32.totalorder %s950_s21, 6  ;;  %s673_s7 = sshll.u32 %s1029_s29, 6 }
  0x1f   : > { %s779_s8 = sshll.u32 %s950_s21, 6  ;;  %s225_s17 = scalar_lea.vmem [#allocation4], %s673_s7 }
  0x20   : > { %p1065_p5 = pnand %p676_p9, %p247_p4  ;;  %s230_s16 = scalar_lea.hbm %s1169_s3, %s779_s8 }
  0x21   : > { %s233_s18 = sshll.u32 %s225_s17, 4  ;;  %s231_s24 = sshll.u32 %s230_s16, 4  ;;  %s234_s18 = int_to_ptr.vmem [resolvable:$true] %s233_s18  ;;  %s232_s24 = int_to_ptr.hbm [resolvable:$true] %s231_s24 }
  0x22   : > { %s222_s25 = scalar_lea.sflag [#allocation5], %s1029_s29  ;;  %s882_s11 = sshra.s32 %s232_s24, 4  ;;  %s883_s11 = int_to_ptr.hbm [resolvable:$true] %s882_s11 }
  0x23   : > { %s884_s12 = scalar_lea.hbm %s883_s11, 64  ;;  %s889_s27 = scalar_lea.hbm %s1169_s3, 320 }
  0x24   : > { %p885_p6 = scmp.ne.s32.totalorder %s883_s11, %s884_s12  ;;  %p890_p12 = scmp.lt.s32.totalorder %s883_s11, %s1169_s3 }
  0x25   : > { %p891_p13 = scmp.lt.s32.totalorder %s889_s27, %s884_s12 }
  0x26   : > { %p887_p9 = pnand %p885_p6, %p856_p11 }
  0x27   : > { %p892_p0 = por %p891_p13, %p890_p12 }
  0x28   : > { %p888_p10 = pneg %p887_p9 }
  0x2a   : > { %p893_p1 = pnand %p892_p0, %p888_p10 }
  0x2c   : > { %896 = shalt.err (!%p893_p1)
}
  0x2d   : > { %814 = dma.hbm_to_vmem [thread:$0]  (!%p1038_p8), %s232_s24, 1024, %s234_s18, %s222_s25, %s952_s30, %s952_s30, %s953_s6  }
  0x2e   : > { %251 = sbr.rel (%p1065_p5) target bundleno = 361 (0x169), region = 40  ;;  %s253_s29 = sand.u32 (!%p1065_p5), 1, %s942_s19  }
  0x2f   : > { %s677_s7 = sshll.u32 (!%p1065_p5), %s253_s29, 7  ;;  %s254_s15 = scalar_lea.sflag (!%p1065_p5), [#allocation3], %s253_s29 }
  0x30   : > { %s1090_s16 = scalar_lea.vmem (!%p1065_p5), [#allocation2], %s677_s7 }
  0x33   : > { %929 = dma.done.wait (%p1024_p7), %s254_s15, 2048  }
  0x34   : > { %931 = vsyncadd (%p1024_p7), %s254_s15, 4294965248  ;;  %s678_s13 = sshll.u32 %s253_s29, 6  ;;  %s264_s17 = scalar_lea.sflag [#allocation5], %s253_s29 }
  0x35   : > { %s1096_s11 = scalar_lea.vmem [#allocation4], %s678_s13 }
  0x36   : > { %933 = dma.done.wait (%p1024_p7), %s264_s17, 1024  }
  0x37   : > { %935 = vsyncadd (%p1024_p7), %s264_s17, 4294966272  ;;  %p305_p8 = scmp.lt.s32.totalorder %s1003_s22, 4  ;;  %v787_v0 = vld [vmem:[%s1090_s16 + $0x38] sm:$0xff]  ;;  %v786_v2 = vld [vmem:[%s1090_s16 + $0x30] sm:$0xff] }
  0x38   : > { %v795_v1 = vld [vmem:[%s1090_s16 + $0x78] sm:$0xff]  ;;  %451 = vmatpush.bf16.msra.mxu0 %v787_v0  ;;  %v794_v3 = vld [vmem:[%s1090_s16 + $0x70] sm:$0xff]  ;;  %v785_v4 = vld [vmem:[%s1090_s16 + $0x28] sm:$0xff] }
  0x39   : > { %464 = vmatpush.bf16.msra.mxu1 %v795_v1  ;;  %s1181_s22 = smov (!%p305_p8, %s1003_s22), 4  ;;  %v793_v5 = vld [vmem:[%s1090_s16 + $0x68] sm:$0xff]  ;;  %v803_v6 = vld [vmem:[%s1096_s11 + $0x38] sm:$0xff]  ;;  %v802_v7 = vld [vmem:[%s1096_s11 + $0x30] sm:$0xff] }
  0x3a   : > { %s307_s6 = scalar_lea.vmem %s1168_s2, %s1181_s22  ;;  %547 = vmatpush.bf16.msra.mxu2 %v803_v6  ;;  %v784_v8 = vld [vmem:[%s1090_s16 + $0x20] sm:$0xff]  ;;  %v801_v10 = vld [vmem:[%s1096_s11 + $0x28] sm:$0xff]  ;;  %v783_v11 = vld [vmem:[%s1090_s16 + $0x18] sm:$0xff]  ;;  %s310_s14 = scalar_lea.vmem %s1170_s4, %s1181_s22 }
  0x3b   : > { %v792_v9 = vld [vmem:[%s1090_s16 + $0x60] sm:$0xff]  ;;  %v791_v12 = vld [vmem:[%s1090_s16 + $0x58] sm:$0xff]  ;;  %v782_v14 = vld [vmem:[%s1090_s16 + $0x10] sm:$0xff]  ;;  %s679_s8 = sshll.u32 %s1181_s22, 3 }
  0x3c   : > { %452 = vmatpush.bf16.msra.mxu0 %v786_v2  ;;  %v800_v13 = vld [vmem:[%s1096_s11 + $0x20] sm:$0xff]  ;;  %v790_v15 = vld [vmem:[%s1090_s16 + $0x50] sm:$0xff]  ;;  %v799_v16 = vld [vmem:[%s1096_s11 + $0x18] sm:$0xff]  ;;  %s314_s15 = scalar_lea.vmem %s1171_s5, %s679_s8 }
  0x3d   : > { %465 = vmatpush.bf16.msra.mxu1 %v794_v3  ;;  %v781_v17 = vld [vmem:[%s1090_s16 + $0x8] sm:$0xff]  ;;  %v798_v19 = vld [vmem:[%s1096_s11 + $0x10] sm:$0xff]  ;;  %v780_v20 = vld [vmem:[%s1090_s16] sm:$0xff] }
  0x3e   : > { %548 = vmatpush.bf16.msra.mxu2 %v802_v7  ;;  %v789_v18 = vld [vmem:[%s1090_s16 + $0x48] sm:$0xff]  ;;  %v788_v21 = vld [vmem:[%s1090_s16 + $0x40] sm:$0xff] }
  0x3f   : > { %v315_v22 = vld [vmem:[%s1166_s0] sm:$0xff]  ;;  %v316_v23 = vld [vmem:[%s1166_s0 + $0x8] sm:$0xff] }
  0x40   : > { %453 = vmatpush.bf16.msra.mxu0 %v785_v4  ;;  %v317_v24 = vpack.c.bf16 %v315_v22, %v315_v22  ;;  %v318_v25 = vpack.c.bf16 %v316_v23, %v316_v23  ;;  %v797_v26 = vld [vmem:[%s1096_s11 + $0x8] sm:$0xff]  ;;  %v796_v27 = vld [vmem:[%s1096_s11] sm:$0xff] }
  0x41   : > { %466 = vmatpush.bf16.msra.mxu1 %v793_v5  ;;  %v850_v28 = vld [vmem:[%s307_s6] ss:$0 sm:$0xff] }
  0x42   : > { %549 = vmatpush.bf16.msra.mxu2 %v801_v10  ;;  %v851_v37 = vld [vmem:[%s310_s14] ss:$0 sm:$0xff] }
  0x44   : > { %454 = vmatpush.bf16.msra.mxu0 %v784_v8 }
  0x45   : > { %467 = vmatpush.bf16.msra.mxu1 %v792_v9 }
  0x46   : > { %550 = vmatpush.bf16.msra.mxu2 %v800_v13 }
  0x48   : > { %455 = vmatpush.bf16.msra.mxu0 %v783_v11 }
  0x49   : > { %468 = vmatpush.bf16.msra.mxu1 %v791_v12 }
  0x4a   : > { %551 = vmatpush.bf16.msra.mxu2 %v799_v16 }
  0x4c   : > { %456 = vmatpush.bf16.msra.mxu0 %v782_v14 }
  0x4d   : > { %469 = vmatpush.bf16.msra.mxu1 %v790_v15 }
  0x4e   : > { %552 = vmatpush.bf16.msra.mxu2 %v798_v19 }
  0x50   : > { %457 = vmatpush.bf16.msra.mxu0 %v781_v17 }
  0x51   : > { %470 = vmatpush.bf16.msra.mxu1 %v789_v18 }
  0x52   : > { %553 = vmatpush.bf16.msra.mxu2 %v797_v26 }
  0x54   : > { %458 = vmatpush.bf16.msra.mxu0 %v780_v20 }
  0x55   : > { %471 = vmatpush.bf16.msra.mxu1 %v788_v21 }
  0x56   : > { %554 = vmatpush.bf16.msra.mxu2 %v796_v27 }
  0x57   : > { %459 = vmatmul.bf16.vlgmr.msra.gmra.mxu0 %v317_v24 }
  0x58   : > { %472 = vmatmul.bf16.vlgmr.msra.gmra.mxu1 %v318_v25 }
  0xd4   : > { %v460_v29 = vpop.f32.mrf.mxu0 }
  0xd5   : > { %v473_v30 = vpop.f32.mrf.mxu1  ;;  %v461_v31 = vadd.f32 %v850_v28, %v460_v29 }
  0xd7   : > { %v474_v32 = vadd.f32 %v473_v30, %v461_v31 }
  0xd9   : > { %v477_v33 = vmax.f32 %v474_v32, 0.0 }
  0xdb   : > { %v478_v34 = vpack.c.bf16 %v477_v33, %v477_v33 }
  0xdc   : > { %v462_v35 = vpop.f32.mrf.mxu0 }
  0xdd   : > { %v475_v36 = vpop.f32.mrf.mxu1  ;;  %555 = vmatmul.bf16.vlgmr.msra.gmra.mxu2 %v478_v34 }
 0x160   : > { %v556_v38 = vpop.f32.mrf.mxu2 }
 0x161   : > { %v557_v39 = vadd.f32 %v851_v37, %v556_v38 }
 0x163   : > { %560 = vst [vmem:[%s314_s15] sm:$0xff] %v557_v39 }
 0x168   : > { %v558_v40 = vpop.f32.mrf.mxu2 }
 0x169 PF: > { %p18_p7 = scmp.ge.s32.totalorder %s1006_s23, 7   ;;  %s1176_s18 = smov %s942_s19 }
 0x16a   : > { %s1177_s19 = smov %s946_s20  ;;  %s1178_s20 = smov %s1016_s26 }
 0x16b   : > { %s1179_s21 = smov %s1006_s23  ;;  %20 = sbr.rel (!%p18_p7) target bundleno = 5 (0x5), region = 99 }
 0x170   :  { %580 = vsyncpa [#allocation3], 1 }
 0x171   :  { %582 = vsyncpa [#allocation3 + $0x1], 1 }
 0x172   :  { %583 = vsyncpa [#allocation5], 1 }
 0x173   :  { %585 = vsyncpa [#allocation5 + $0x1], 1 }

// kernel: ft_net_lpn_forward.2
= control target key start
LH: loop header
LB: loop body
LE: loop exit
PB: predicated region body
PF: predicated region fallthrough
CT: control target
= control target key end

     0   :  { %vm74_vm0 = vcmask 1043456   ;;  %v236_v48 = vmov 256.0   ;;  %vm194_vm1 = vcmask 1041408   ;;  %vm171_vm3 = vcmask 1041409   ;;  %s309_s0 = inlined_call_operand.vmem [shape: f32[8,4,256], index: 0, kind: input, shape index: {}]   ;;  %s310_s1 = inlined_call_operand.vmem [shape: bf16[4,256], index: 1, kind: input, shape index: {}]   ;;  %s311_s2 = inlined_call_operand.vmem [shape: f32[1,256], index: 2, kind: input, shape index: {}]   ;;  %s312_s3 = inlined_call_operand.vmem [shape: f32[8,256], index: 3, kind: output, shape index: {}]  }
   0x1   :  { %v15_v0 = vld [vmem:[%s309_s0] sm:$0xff]  ;;  %v17_v1 = vld [vmem:[%s309_s0 + $0x10] sm:$0xff]  ;;  %v16_v2 = vld [vmem:[%s309_s0 + $0x8] sm:$0xff]  ;;  %234 = vrcp.f32 %v236_v48  ;;  %vm173_vm4 = vcmask 1042434   ;;  %vm175_vm5 = vcmask 1043459   ;;  %vm177_vm6 = vcmask 1044484  }
   0x2   :  { %31 = vst [vmem:[#allocation1] ss:$2 sm:$0xff] %v15_v0  ;;  %v18_v3 = vld [vmem:[%s309_s0 + $0x18] sm:$0xff]  ;;  %v19_v4 = vld [vmem:[%s309_s0 + $0x20] sm:$0xff]  ;;  %v21_v5 = vld [vmem:[%s309_s0 + $0x30] sm:$0xff]  ;;  %v161_v0 = vlaneseq  ;;  %vm179_vm7 = vcmask 1045509  }
   0x3   :  { %39 = vst [vmem:[#allocation1 + $0x20] ss:$2 sm:$0xff] %v17_v1  ;;  %v20_v10 = vld [vmem:[%s309_s0 + $0x28] sm:$0xff]  ;;  %v22_v16 = vld [vmem:[%s309_s0 + $0x38] sm:$0xff]  ;;  %v138_v51 = vld [vmem:[%s310_s1] sm:$0xf] }
   0x4   :  { %35 = vst [vmem:[#allocation1 + $0x10] ss:$2 sm:$0xff] %v16_v2  ;;  %vm181_vm8 = vcmask 1046534   ;;  %vm183_vm9 = vcmask 1047559   ;;  %vm190_vm10 = vcmask 31744  }
   0x5   :  { %43 = vst [vmem:[#allocation1 + $0x30] ss:$2 sm:$0xff] %v18_v3 }
   0x7   :  { %v235_v49 = vpop.eup %234 }
   0x8   :  { %v116_v50 = vmul.f32 256.0, %v235_v49  ;;  %vm120_vm2 = vweird.f32 %v235_v49 }
   0x9   :  { %v32_v6 = vld.sshfl [vmem:[#allocation1] sm:$0xff pattern:$0x75316420]  ;;  %v33_v7 = vld.sshfl [vmem:[#allocation1 + $0x8] sm:$0xff pattern:$0x75316420] }
   0xa   :  { %v75_v8 = vsel %vm74_vm0, %v32_v6, 0.0  ;;  %v76_v9 = vsel %vm74_vm0, %v33_v7, 0.0  ;;  %46 = vst [vmem:[#allocation1] ss:$2 sm:$0xff] %v19_v4  ;;  %v117_v52 = vsub.f32 1.0, %v116_v50 }
   0xb   :  { %v77_v11 = vadd.f32 %v76_v9, %v75_v8  ;;  %v40_v12 = vld.sshfl [vmem:[#allocation1 + $0x20] sm:$0xff pattern:$0x75316420]  ;;  %v41_v13 = vld.sshfl [vmem:[#allocation1 + $0x28] sm:$0xff pattern:$0x75316420] }
   0xc   :  { %v85_v14 = vsel %vm74_vm0, %v40_v12, 0.0  ;;  %v86_v15 = vsel %vm74_vm0, %v41_v13, 0.0  ;;  %52 = vst [vmem:[#allocation1 + $0x20] ss:$2 sm:$0xff] %v21_v5  ;;  %v118_v53 = vmul.f32 %v235_v49, %v117_v52  ;;  %v162_v8 = vand.u32 127, %v161_v0 }
   0xd   :  { %78 = vadd.xlane.f32.xlu0 %v77_v11  ;;  %v87_v17 = vadd.f32 %v86_v15, %v85_v14  ;;  %v36_v18 = vld.sshfl [vmem:[#allocation1 + $0x10] sm:$0xff pattern:$0x75316420]  ;;  %v37_v19 = vld.sshfl [vmem:[#allocation1 + $0x18] sm:$0xff pattern:$0x75316420] }
   0xe   :  { %49 = vst [vmem:[#allocation1 + $0x10] ss:$2 sm:$0xff] %v20_v10  ;;  %v80_v20 = vsel %vm74_vm0, %v36_v18, 0.0  ;;  %v81_v21 = vsel %vm74_vm0, %v37_v19, 0.0  ;;  %v119_v58 = vadd.f32 %v235_v49, %v118_v53 }
   0xf   :  { %88 = vadd.xlane.f32.xlu1 %v87_v17  ;;  %v44_v22 = vld.sshfl [vmem:[#allocation1 + $0x30] sm:$0xff pattern:$0x75316420]  ;;  %v45_v23 = vld.sshfl [vmem:[#allocation1 + $0x38] sm:$0xff pattern:$0x75316420]  ;;  %v82_v26 = vadd.f32 %v81_v21, %v80_v20 }
  0x10   :  { %55 = vst [vmem:[#allocation1 + $0x30] ss:$2 sm:$0xff] %v22_v16  ;;  %v90_v24 = vsel %vm74_vm0, %v44_v22, 0.0  ;;  %v91_v25 = vsel %vm74_vm0, %v45_v23, 0.0  ;;  %v121_v59 = vsel %vm120_vm2, %v235_v49, %v119_v58 }
  0x11   :  { %v47_v27 = vld.sshfl [vmem:[#allocation1] sm:$0xff pattern:$0x75316420]  ;;  %v48_v28 = vld.sshfl [vmem:[#allocation1 + $0x8] sm:$0xff pattern:$0x75316420]  ;;  %v92_v32 = vadd.f32 %v91_v25, %v90_v24 }
  0x12   :  { %v95_v29 = vsel %vm74_vm0, %v47_v27, 0.0  ;;  %v96_v30 = vsel %vm74_vm0, %v48_v28, 0.0 }
  0x13   :  { %v97_v31 = vadd.f32 %v96_v30, %v95_v29  ;;  %v53_v33 = vld.sshfl [vmem:[#allocation1 + $0x20] sm:$0xff pattern:$0x75316420]  ;;  %v54_v34 = vld.sshfl [vmem:[#allocation1 + $0x28] sm:$0xff pattern:$0x75316420] }
  0x14   :  { %v105_v39 = vsel %vm74_vm0, %v53_v33, 0.0  ;;  %v106_v40 = vsel %vm74_vm0, %v54_v34, 0.0 }
  0x15   :  { %83 = vadd.xlane.f32.xlu0 %v82_v26  ;;  %98 = vadd.xlane.f32.xlu2 %v97_v31  ;;  %v50_v35 = vld.sshfl [vmem:[#allocation1 + $0x10] sm:$0xff pattern:$0x75316420]  ;;  %v51_v36 = vld.sshfl [vmem:[#allocation1 + $0x18] sm:$0xff pattern:$0x75316420]  ;;  %v107_v46 = vadd.f32 %v106_v40, %v105_v39 }
  0x16   :  { %v100_v37 = vsel %vm74_vm0, %v50_v35, 0.0  ;;  %v101_v38 = vsel %vm74_vm0, %v51_v36, 0.0  ;;  %187 = vst [vmem:[#allocation1] ss:$4 sm:$0xff] %v138_v51 }
  0x17   :  { %93 = vadd.xlane.f32.xlu1 %v92_v32  ;;  %v56_v41 = vld.sshfl [vmem:[#allocation1 + $0x30] sm:$0xff pattern:$0x75316420]  ;;  %v57_v42 = vld.sshfl [vmem:[#allocation1 + $0x38] sm:$0xff pattern:$0x75316420]  ;;  %v102_v45 = vadd.f32 %v101_v38, %v100_v37 }
  0x18   :  { %v110_v43 = vsel %vm74_vm0, %v56_v41, 0.0  ;;  %v111_v44 = vsel %vm74_vm0, %v57_v42, 0.0 }
  0x19   :  { %v112_v47 = vadd.f32 %v111_v44, %v110_v43 }
  0x1d   :  { %103 = vadd.xlane.f32.xlu2 %v102_v45  ;;  %108 = vadd.xlane.f32.xlu0 %v107_v46  ;;  %v188_v54 = vld.sshfl [vmem:[#allocation1] sm:$0xff pattern:$0x73625140]  ;;  %v189_v56 = vld.sshfl [vmem:[#allocation1 + $0x8] sm:$0xff pattern:$0x73625140] }
  0x1e   :  { %v195_v55 = vsel %vm194_vm1, %v188_v54, 0  ;;  %v197_v57 = vsel %vm194_vm1, %v189_v56, 0  ;;  %v139_v46 = vld [vmem:[%s311_s2] sm:$0x3] }
  0x1f   :  { %113 = vadd.xlane.f32.xlu1 %v112_v47  ;;  %206 = vmatpush.bf16.msra.mxu0 %v195_v55  ;;  %v141_v47 = vperm.slane %v139_v46, 0  ;;  %v142_v48 = vperm.slane %v139_v46, 1 }
  0x20   :  { %219 = vmatpush.bf16.msra.mxu1 %v197_v57 }
  0x80   :  { %v79_v60 = vpop.xlane.xlu0 %78 }
  0x81   :  { %v122_v62 = vmul.f32 %v121_v59, %v79_v60 }
  0x82   :  { %v89_v61 = vpop.xlane.xlu1 %88 }
  0x83   :  { %v124_v63 = vmul.f32 %v121_v59, %v89_v61  ;;  %v130_v1 = vpack.c.bf16 %v122_v62, %v122_v62 }
  0x85   :  { %v132_v2 = vpack.c.bf16 %v124_v63, %v124_v63  ;;  %v153_v9 = vunpack.c.l.b16 %v130_v1 }
  0x87   :  { %v155_v12 = vunpack.c.l.b16 %v132_v2  ;;  %v163_v16 = vperm.slane %v153_v9, %v162_v8 }
  0x88   :  { %v84_v3 = vpop.xlane.xlu0 %83  ;;  %v99_v4 = vpop.xlane.xlu2 %98 }
  0x89   :  { %v123_v5 = vmul.f32 %v121_v59, %v84_v3  ;;  %v126_v6 = vmul.f32 %v121_v59, %v99_v4  ;;  %v165_v19 = vperm.slane %v155_v12, %v162_v8 }
  0x8a   :  { %v94_v7 = vpop.xlane.xlu1 %93 }
  0x8b   :  { %v131_v10 = vpack.c.bf16 %v123_v5, %v123_v5  ;;  %v125_v11 = vmul.f32 %v121_v59, %v94_v7  ;;  %v134_v15 = vpack.c.bf16 %v126_v6, %v126_v6 }
  0x8d   :  { %v154_v13 = vunpack.c.l.b16 %v131_v10  ;;  %v133_v14 = vpack.c.bf16 %v125_v11, %v125_v11  ;;  %v157_v26 = vunpack.c.l.b16 %v134_v15 }
  0x8f   :  { %v164_v17 = vperm.slane %v154_v13, %v162_v8  ;;  %v156_v18 = vunpack.c.l.b16 %v133_v14  ;;  %v167_v36 = vperm.slane %v157_v26, %v162_v8 }
  0x90   :  { %v104_v20 = vpop.xlane.xlu2 %103  ;;  %v109_v21 = vpop.xlane.xlu0 %108 }
  0x91   :  { %v172_v22 = vsel %vm171_vm3, %v164_v17, %v163_v16  ;;  %v166_v23 = vperm.slane %v156_v18, %v162_v8  ;;  %v127_v24 = vmul.f32 %v121_v59, %v104_v20  ;;  %v128_v25 = vmul.f32 %v121_v59, %v109_v21 }
  0x92   :  { %v174_v27 = vsel %vm173_vm4, %v165_v19, %v172_v22  ;;  %v114_v28 = vpop.xlane.xlu1 %113 }
  0x93   :  { %v135_v29 = vpack.c.bf16 %v127_v24, %v127_v24  ;;  %v136_v30 = vpack.c.bf16 %v128_v25, %v128_v25  ;;  %v129_v31 = vmul.f32 %v121_v59, %v114_v28  ;;  %v176_v32 = vsel %vm175_vm5, %v166_v23, %v174_v27 }
  0x94   :  { %v178_v40 = vsel %vm177_vm6, %v167_v36, %v176_v32 }
  0x95   :  { %v158_v33 = vunpack.c.l.b16 %v135_v29  ;;  %v159_v34 = vunpack.c.l.b16 %v136_v30  ;;  %v137_v35 = vpack.c.bf16 %v129_v31, %v129_v31 }
  0x97   :  { %v168_v37 = vperm.slane %v158_v33, %v162_v8  ;;  %v169_v38 = vperm.slane %v159_v34, %v162_v8  ;;  %v160_v39 = vunpack.c.l.b16 %v137_v35 }
  0x99   :  { %v180_v41 = vsel %vm179_vm7, %v168_v37, %v178_v40  ;;  %v170_v42 = vperm.slane %v160_v39, %v162_v8 }
  0x9a   :  { %v182_v43 = vsel %vm181_vm8, %v169_v38, %v180_v41 }
  0x9b   :  { %v184_v44 = vsel %vm183_vm9, %v170_v42, %v182_v43 }
  0x9c   :  { %v185_v45 = vpack.c.b16 %v184_v44, %v184_v44 }
  0x9e   :  { %231 = vmatmul.msk.bf16.vlgmr.msra.gmra.mxu0 %vm190_vm10, %v185_v45  ;;  %232 = vmatmul.msk.bf16.vlgmr.msra.gmra.mxu1 %vm190_vm10, %v185_v45 }
 0x11b   :  { %v208_v49 = vpop.f32.mrf.mxu0  ;;  %v221_v50 = vpop.f32.mrf.mxu1 }
 0x11c   :  { %v209_v51 = vadd.f32 %v208_v49, %v141_v47  ;;  %v222_v52 = vadd.f32 %v221_v50, %v142_v48 }
 0x11e   :  { %225 = vst [vmem:[%s312_s3] sm:$0xff] %v209_v51 }
 0x11f   :  { %226 = vst [vmem:[%s312_s3 + $0x8] sm:$0xff] %v222_v52 }
 0x123   :  { %v210_v53 = vpop.f32.mrf.mxu0  ;;  %v223_v54 = vpop.f32.mrf.mxu1 }

</bundles_post_ra>
